<compile_context>
chip_gen: v5e
topology: v5e:2x2
jax: 0.10.0
libtpu: 0.0.40
codegen_flags: <defaults>
</compile_context>

<pallas_src>
import functools

import jax
import jax.numpy as jnp
from jax.experimental import pallas as pl
from jax.experimental.pallas import tpu as pltpu


def make_banded_weights(w_hwio, W):
    """Fold the width-axis taps (and padding=1 along W) of a 3x3 conv into a banded
    matmul operand.

    w_hwio: (3, 3, Cin, Cout) -> band: (3, W*Cin, W*Cout) with
      band[dy, xw*Cin + ci, x*Cout + co] = w[dy, xw - x + 1, ci, co]  if |xw - x| <= 1
                                           0                          otherwise
    so that  out_row[y] = sum_dy  x_row[y + dy - 1] @ band[dy]   (rows out of range = 0).
    """
    kh, kw, cin, cout = w_hwio.shape
    rel = jnp.arange(W)[:, None] - jnp.arange(W)[None, :] + 1      # xw - x + 1
    valid = (rel >= 0) & (rel < kw)
    rel_c = jnp.clip(rel, 0, kw - 1)
    g = w_hwio[:, rel_c, :, :]                                     # (kh, W, W, cin, cout)
    g = jnp.where(valid[None, :, :, None, None], g, jnp.zeros((), w_hwio.dtype))
    return jnp.transpose(g, (0, 1, 3, 2, 4)).reshape(kh, W * cin, W * cout)


def _shared_brain_kernel(x_ref, band1_ref, bias1_ref, band2_ref, bias2_ref,
                         o_ref, xpad_ref, hpad_ref, *,
                         H, W, Cin, Cmid, Cout, neg_slope):
    """One batch element.

    x_ref    : (1, H, W*Cin)       packed input rows (lane-dense)
    band1_ref: (3, W*Cin,  W*Cmid) banded conv1 weights
    bias1_ref: (1, W*Cmid)         conv1 bias tiled across W
    band2_ref: (3, W*Cmid, W*Cout) banded conv2 weights
    bias2_ref: (1, W*Cout)         conv2 bias tiled across W
    o_ref    : (1, H, W*Cout)      packed output rows (lane-dense, W*Cout = 128 here)
    xpad_ref : (H+2, W*Cin)  VMEM scratch, rows 0 / H+1 are the vertical zero halo
    hpad_ref : (H+2, W*Cmid) VMEM scratch for the fused intermediate
    """
    zx = jnp.zeros((1, W * Cin), jnp.float32)
    zh = jnp.zeros((1, W * Cmid), jnp.float32)

    # Stage the input into the vertically padded scratch (lane-aligned stores).
    xpad_ref[pl.ds(0, 1), :] = zx
    xpad_ref[pl.ds(H + 1, 1), :] = zx
    xpad_ref[pl.ds(1, H), :] = x_ref[0].astype(jnp.float32)

    # conv1: out[y] = sum_dy xpad[y+dy] @ band1[dy]   -> (H, W*Cmid), then bias + LeakyReLU
    acc1 = jnp.zeros((H, W * Cmid), jnp.float32)
    for dy in range(3):  # static unroll: 3 MXU pushes, no per-tap relayouts
        acc1 = acc1 + jnp.dot(xpad_ref[pl.ds(dy, H), :], band1_ref[dy],
                              preferred_element_type=jnp.float32)
    acc1 = acc1 + bias1_ref[...]
    h = jnp.where(acc1 > 0, acc1, neg_slope * acc1)

    # Fused: intermediate stays in VMEM (never written to HBM).
    hpad_ref[pl.ds(0, 1), :] = zh
    hpad_ref[pl.ds(H + 1, 1), :] = zh
    hpad_ref[pl.ds(1, H), :] = h

    # conv2: out[y] = sum_dy hpad[y+dy] @ band2[dy]   -> (H, W*Cout)
    acc2 = jnp.zeros((H, W * Cout), jnp.float32)
    for dy in range(3):
        acc2 = acc2 + jnp.dot(hpad_ref[pl.ds(dy, H), :], band2_ref[dy],
                              preferred_element_type=jnp.float32)
    acc2 = acc2 + bias2_ref[...]
    o_ref[0] = acc2.astype(o_ref.dtype)


def shared_brain_forward(params, x_nchw, *, neg_slope=0.2):
    """SharedBrain forward. Input/output in NCHW to match the PyTorch module."""
    B, Cin, H, W = x_nchw.shape
    Cmid = params["w1"].shape[-1]
    Cout = params["w2"].shape[-1]

    # NCHW -> lane-dense packed rows (B, H, W*Cin); single XLA transpose, no jnp.pad.
    x_packed = jnp.transpose(x_nchw, (0, 2, 3, 1)).reshape(B, H, W * Cin)

    band1 = make_banded_weights(params["w1"].astype(jnp.float32), W)   # (3, W*Cin,  W*Cmid)
    band2 = make_banded_weights(params["w2"].astype(jnp.float32), W)   # (3, W*Cmid, W*Cout)
    bias1 = jnp.tile(params["b1"].astype(jnp.float32), W).reshape(1, W * Cmid)
    bias2 = jnp.tile(params["b2"].astype(jnp.float32), W).reshape(1, W * Cout)

    kernel = functools.partial(_shared_brain_kernel, H=H, W=W, Cin=Cin,
                               Cmid=Cmid, Cout=Cout, neg_slope=neg_slope)

    out_packed = pl.pallas_call(
        kernel,
        out_shape=jax.ShapeDtypeStruct((B, H, W * Cout), x_nchw.dtype),
        grid_spec=pltpu.PrefetchScalarGridSpec(
            num_scalar_prefetch=0,
            grid=(B,),
            in_specs=[
                pl.BlockSpec((1, H, W * Cin), lambda b: (b, 0, 0)),
                pl.BlockSpec((3, W * Cin, W * Cmid), lambda b: (0, 0, 0)),
                pl.BlockSpec((1, W * Cmid), lambda b: (0, 0)),
                pl.BlockSpec((3, W * Cmid, W * Cout), lambda b: (0, 0, 0)),
                pl.BlockSpec((1, W * Cout), lambda b: (0, 0)),
            ],
            out_specs=pl.BlockSpec((1, H, W * Cout), lambda b: (b, 0, 0)),
            scratch_shapes=[
                pltpu.VMEM((H + 2, W * Cin), jnp.float32),   # padded input rows
                pltpu.VMEM((H + 2, W * Cmid), jnp.float32),  # fused intermediate
            ],
        ),
        compiler_params=pltpu.CompilerParams(
            dimension_semantics=("parallel",),       # batch axis feeds both TCs on v7x
            vmem_limit_bytes=32 * 1024 * 1024,
        ),
    )(x_packed, band1, bias1, band2, bias2)

    # packed (B, H, W*Cout) -> NCHW
    return jnp.transpose(out_packed.reshape(B, H, W, Cout), (0, 3, 1, 2))


def init_shared_brain_params(key, in_channels, out_channels, dtype=jnp.float32):
    """Deterministic init mimicking PyTorch Conv2d defaults (uniform +/- 1/sqrt(fan_in))."""
    k1, k2, k3, k4 = jax.random.split(key, 4)
    fan1 = in_channels * 9
    fan2 = out_channels * 9
    bound1 = 1.0 / jnp.sqrt(fan1)
    bound2 = 1.0 / jnp.sqrt(fan2)
    w1 = jax.random.uniform(k1, (3, 3, in_channels, out_channels), dtype,
                            minval=-bound1, maxval=bound1)
    b1 = jax.random.uniform(k2, (out_channels,), dtype,
                            minval=-bound1, maxval=bound1)
    w2 = jax.random.uniform(k3, (3, 3, out_channels, out_channels), dtype,
                            minval=-bound2, maxval=bound2)
    b2 = jax.random.uniform(k4, (out_channels,), dtype,
                            minval=-bound2, maxval=bound2)
    return dict(w1=w1, b1=b1, w2=w2, b2=b2)


def _reference_forward(params, x_nchw):
    """Pure-JAX reference (lax.conv) for a correctness sanity check."""
    def conv(x, w, b):
        y = jax.lax.conv_general_dilated(
            x, w, window_strides=(1, 1), padding="SAME",
            dimension_numbers=("NCHW", "HWIO", "NCHW"))
        return y + b[None, :, None, None]
    h = conv(x_nchw, params["w1"], params["b1"])
    h = jnp.where(h > 0, h, 0.2 * h)
    return conv(h, params["w2"], params["b2"])


if __name__ == "__main__":
    key = jax.random.PRNGKey(0)
    k_param, k_x = jax.random.split(key)

    B, Cin, Cout, H, W = 2, 4, 8, 16, 16
    params = init_shared_brain_params(k_param, Cin, Cout)
    x = jax.random.normal(k_x, (B, Cin, H, W), jnp.float32)

    out = shared_brain_forward(params, x)
    out = jax.block_until_ready(out)

    ref = _reference_forward(params, x)
    assert out.shape == (B, Cout, H, W)
    assert jnp.allclose(out, ref, atol=2e-4, rtol=2e-4)

    print("KERNEL_OK")
</pallas_src>

<mosaic_0001>
module attributes {stable_mosaic.version = 11 : i64} {
  func.func @_shared_brain_kernel(%arg0: i32, %arg1: memref<1x16x64xf32, #tpu.memory_space<vmem>>, %arg2: memref<3x64x128xf32, #tpu.memory_space<vmem>>, %arg3: memref<1x128xf32, #tpu.memory_space<vmem>>, %arg4: memref<3x128x128xf32, #tpu.memory_space<vmem>>, %arg5: memref<1x128xf32, #tpu.memory_space<vmem>>, %arg6: memref<1x16x128xf32, #tpu.memory_space<vmem>>, %arg7: memref<18x64xf32, #tpu.memory_space<vmem>>, %arg8: memref<18x128xf32, #tpu.memory_space<vmem>>) attributes {dimension_semantics = [#tpu.dimension_semantics<parallel>], iteration_bounds = array<i64: 2>, scalar_prefetch = 0 : i64, scratch_operands = 2 : i64, tpu.core_type = #tpu.core_type<tc>, window_params = [{transform_indices = @transform_0, window_bounds = array<i64: 1, 16, 64>}, {pipeline_mode = #tpu.pipeline_mode<synchronous>, transform_indices = @transform_1, window_bounds = array<i64: 3, 64, 128>}, {pipeline_mode = #tpu.pipeline_mode<synchronous>, transform_indices = @transform_2, window_bounds = array<i64: 1, 128>}, {pipeline_mode = #tpu.pipeline_mode<synchronous>, transform_indices = @transform_3, window_bounds = array<i64: 3, 128, 128>}, {pipeline_mode = #tpu.pipeline_mode<synchronous>, transform_indices = @transform_4, window_bounds = array<i64: 1, 128>}, {transform_indices = @transform_5, window_bounds = array<i64: 1, 16, 128>}]} {
    %cst = arith.constant 0.000000e+00 : f32
    %0 = vector.broadcast %cst : f32 to vector<1x64xf32>
    %cst_0 = arith.constant 0.000000e+00 : f32
    %1 = vector.broadcast %cst_0 : f32 to vector<1x128xf32>
    %c0 = arith.constant 0 : index
    %c0_1 = arith.constant 0 : index
    %2 = vector.load %arg7[%c0, %c0_1] : memref<18x64xf32, #tpu.memory_space<vmem>>, vector<1x64xf32>
    tpu.vector_store %arg7[%c0, %c0_1], %0 {strides = array<i32>} : memref<18x64xf32, #tpu.memory_space<vmem>>, vector<1x64xf32>,
    %c17 = arith.constant 17 : index
    %c0_2 = arith.constant 0 : index
    %3 = vector.load %arg7[%c17, %c0_2] : memref<18x64xf32, #tpu.memory_space<vmem>>, vector<1x64xf32>
    tpu.vector_store %arg7[%c17, %c0_2], %0 {strides = array<i32>} : memref<18x64xf32, #tpu.memory_space<vmem>>, vector<1x64xf32>,
    %c0_3 = arith.constant 0 : index
    %c0_4 = arith.constant 0 : index
    %c0_5 = arith.constant 0 : index
    %4 = vector.load %arg1[%c0_3, %c0_4, %c0_5] : memref<1x16x64xf32, #tpu.memory_space<vmem>>, vector<1x16x64xf32>
    %5 = vector.shape_cast %4 : vector<1x16x64xf32> to vector<16x64xf32>
    %c1 = arith.constant 1 : index
    %c0_6 = arith.constant 0 : index
    %6 = vector.load %arg7[%c1, %c0_6] : memref<18x64xf32, #tpu.memory_space<vmem>>, vector<16x64xf32>
    tpu.vector_store %arg7[%c1, %c0_6], %5 {strides = array<i32>} : memref<18x64xf32, #tpu.memory_space<vmem>>, vector<16x64xf32>,
    %cst_7 = arith.constant 0.000000e+00 : f32
    %7 = vector.broadcast %cst_7 : f32 to vector<16x128xf32>
    %c0_8 = arith.constant 0 : index
    %c0_9 = arith.constant 0 : index
    %8 = vector.load %arg7[%c0_8, %c0_9] : memref<18x64xf32, #tpu.memory_space<vmem>>, vector<16x64xf32>
    %c0_10 = arith.constant 0 : index
    %c0_11 = arith.constant 0 : index
    %c0_12 = arith.constant 0 : index
    %9 = vector.load %arg2[%c0_10, %c0_11, %c0_12] : memref<3x64x128xf32, #tpu.memory_space<vmem>>, vector<1x64x128xf32>
    %10 = vector.shape_cast %9 : vector<1x64x128xf32> to vector<64x128xf32>
    %cst_13 = arith.constant dense<0.000000e+00> : vector<16x128xf32>
    %11 = tpu.matmul %8, %10, %cst_13 {dimension_numbers = #tpu.dot_dimension_numbers<[1], [0], [0], [1], [0, 0, 1, 1], [], []>} : vector<16x64xf32>, vector<64x128xf32>, vector<16x128xf32> -> vector<16x128xf32>
    %12 = arith.addf %7, %11 : vector<16x128xf32>
    %c1_14 = arith.constant 1 : index
    %c0_15 = arith.constant 0 : index
    %13 = vector.load %arg7[%c1_14, %c0_15] : memref<18x64xf32, #tpu.memory_space<vmem>>, vector<16x64xf32>
    %c1_16 = arith.constant 1 : index
    %c0_17 = arith.constant 0 : index
    %c0_18 = arith.constant 0 : index
    %14 = vector.load %arg2[%c1_16, %c0_17, %c0_18] : memref<3x64x128xf32, #tpu.memory_space<vmem>>, vector<1x64x128xf32>
    %15 = vector.shape_cast %14 : vector<1x64x128xf32> to vector<64x128xf32>
    %cst_19 = arith.constant dense<0.000000e+00> : vector<16x128xf32>
    %16 = tpu.matmul %13, %15, %cst_19 {dimension_numbers = #tpu.dot_dimension_numbers<[1], [0], [0], [1], [0, 0, 1, 1], [], []>} : vector<16x64xf32>, vector<64x128xf32>, vector<16x128xf32> -> vector<16x128xf32>
    %17 = arith.addf %12, %16 : vector<16x128xf32>
    %c2 = arith.constant 2 : index
    %c0_20 = arith.constant 0 : index
    %18 = vector.load %arg7[%c2, %c0_20] : memref<18x64xf32, #tpu.memory_space<vmem>>, vector<16x64xf32>
    %c2_21 = arith.constant 2 : index
    %c0_22 = arith.constant 0 : index
    %c0_23 = arith.constant 0 : index
    %19 = vector.load %arg2[%c2_21, %c0_22, %c0_23] : memref<3x64x128xf32, #tpu.memory_space<vmem>>, vector<1x64x128xf32>
    %20 = vector.shape_cast %19 : vector<1x64x128xf32> to vector<64x128xf32>
    %cst_24 = arith.constant dense<0.000000e+00> : vector<16x128xf32>
    %21 = tpu.matmul %18, %20, %cst_24 {dimension_numbers = #tpu.dot_dimension_numbers<[1], [0], [0], [1], [0, 0, 1, 1], [], []>} : vector<16x64xf32>, vector<64x128xf32>, vector<16x128xf32> -> vector<16x128xf32>
    %22 = arith.addf %17, %21 : vector<16x128xf32>
    %c0_25 = arith.constant 0 : index
    %c0_26 = arith.constant 0 : index
    %23 = vector.load %arg3[%c0_25, %c0_26] : memref<1x128xf32, #tpu.memory_space<vmem>>, vector<1x128xf32>
    %24 = vector.broadcast %23 : vector<1x128xf32> to vector<16x128xf32>
    %25 = arith.addf %22, %24 : vector<16x128xf32>
    %cst_27 = arith.constant 0.000000e+00 : f32
    %26 = vector.broadcast %cst_27 : f32 to vector<16x128xf32>
    %27 = arith.cmpf ogt, %25, %26 : vector<16x128xf32>
    %cst_28 = arith.constant 2.000000e-01 : f32
    %28 = vector.broadcast %cst_28 : f32 to vector<16x128xf32>
    %29 = arith.mulf %28, %25 : vector<16x128xf32>
    %30 = arith.select %27, %25, %29 : vector<16x128xi1>, vector<16x128xf32>
    %c0_29 = arith.constant 0 : index
    %c0_30 = arith.constant 0 : index
    %31 = vector.load %arg8[%c0_29, %c0_30] : memref<18x128xf32, #tpu.memory_space<vmem>>, vector<1x128xf32>
    tpu.vector_store %arg8[%c0_29, %c0_30], %1 {strides = array<i32>} : memref<18x128xf32, #tpu.memory_space<vmem>>, vector<1x128xf32>,
    %c17_31 = arith.constant 17 : index
    %c0_32 = arith.constant 0 : index
    %32 = vector.load %arg8[%c17_31, %c0_32] : memref<18x128xf32, #tpu.memory_space<vmem>>, vector<1x128xf32>
    tpu.vector_store %arg8[%c17_31, %c0_32], %1 {strides = array<i32>} : memref<18x128xf32, #tpu.memory_space<vmem>>, vector<1x128xf32>,
    %c1_33 = arith.constant 1 : index
    %c0_34 = arith.constant 0 : index
    %33 = vector.load %arg8[%c1_33, %c0_34] : memref<18x128xf32, #tpu.memory_space<vmem>>, vector<16x128xf32>
    tpu.vector_store %arg8[%c1_33, %c0_34], %30 {strides = array<i32>} : memref<18x128xf32, #tpu.memory_space<vmem>>, vector<16x128xf32>,
    %cst_35 = arith.constant 0.000000e+00 : f32
    %34 = vector.broadcast %cst_35 : f32 to vector<16x128xf32>
    %c0_36 = arith.constant 0 : index
    %c0_37 = arith.constant 0 : index
    %35 = vector.load %arg8[%c0_36, %c0_37] : memref<18x128xf32, #tpu.memory_space<vmem>>, vector<16x128xf32>
    %c0_38 = arith.constant 0 : index
    %c0_39 = arith.constant 0 : index
    %c0_40 = arith.constant 0 : index
    %36 = vector.load %arg4[%c0_38, %c0_39, %c0_40] : memref<3x128x128xf32, #tpu.memory_space<vmem>>, vector<1x128x128xf32>
    %37 = vector.shape_cast %36 : vector<1x128x128xf32> to vector<128x128xf32>
    %cst_41 = arith.constant dense<0.000000e+00> : vector<16x128xf32>
    %38 = tpu.matmul %35, %37, %cst_41 {dimension_numbers = #tpu.dot_dimension_numbers<[1], [0], [0], [1], [0, 0, 1, 1], [], []>} : vector<16x128xf32>, vector<128x128xf32>, vector<16x128xf32> -> vector<16x128xf32>
    %39 = arith.addf %34, %38 : vector<16x128xf32>
    %c1_42 = arith.constant 1 : index
    %c0_43 = arith.constant 0 : index
    %40 = vector.load %arg8[%c1_42, %c0_43] : memref<18x128xf32, #tpu.memory_space<vmem>>, vector<16x128xf32>
    %c1_44 = arith.constant 1 : index
    %c0_45 = arith.constant 0 : index
    %c0_46 = arith.constant 0 : index
    %41 = vector.load %arg4[%c1_44, %c0_45, %c0_46] : memref<3x128x128xf32, #tpu.memory_space<vmem>>, vector<1x128x128xf32>
    %42 = vector.shape_cast %41 : vector<1x128x128xf32> to vector<128x128xf32>
    %cst_47 = arith.constant dense<0.000000e+00> : vector<16x128xf32>
    %43 = tpu.matmul %40, %42, %cst_47 {dimension_numbers = #tpu.dot_dimension_numbers<[1], [0], [0], [1], [0, 0, 1, 1], [], []>} : vector<16x128xf32>, vector<128x128xf32>, vector<16x128xf32> -> vector<16x128xf32>
    %44 = arith.addf %39, %43 : vector<16x128xf32>
    %c2_48 = arith.constant 2 : index
    %c0_49 = arith.constant 0 : index
    %45 = vector.load %arg8[%c2_48, %c0_49] : memref<18x128xf32, #tpu.memory_space<vmem>>, vector<16x128xf32>
    %c2_50 = arith.constant 2 : index
    %c0_51 = arith.constant 0 : index
    %c0_52 = arith.constant 0 : index
    %46 = vector.load %arg4[%c2_50, %c0_51, %c0_52] : memref<3x128x128xf32, #tpu.memory_space<vmem>>, vector<1x128x128xf32>
    %47 = vector.shape_cast %46 : vector<1x128x128xf32> to vector<128x128xf32>
    %cst_53 = arith.constant dense<0.000000e+00> : vector<16x128xf32>
    %48 = tpu.matmul %45, %47, %cst_53 {dimension_numbers = #tpu.dot_dimension_numbers<[1], [0], [0], [1], [0, 0, 1, 1], [], []>} : vector<16x128xf32>, vector<128x128xf32>, vector<16x128xf32> -> vector<16x128xf32>
    %49 = arith.addf %44, %48 : vector<16x128xf32>
    %c0_54 = arith.constant 0 : index
    %c0_55 = arith.constant 0 : index
    %50 = vector.load %arg5[%c0_54, %c0_55] : memref<1x128xf32, #tpu.memory_space<vmem>>, vector<1x128xf32>
    %51 = vector.broadcast %50 : vector<1x128xf32> to vector<16x128xf32>
    %52 = arith.addf %49, %51 : vector<16x128xf32>
    %c0_56 = arith.constant 0 : index
    %c0_57 = arith.constant 0 : index
    %c0_58 = arith.constant 0 : index
    %53 = vector.load %arg6[%c0_56, %c0_57, %c0_58] : memref<1x16x128xf32, #tpu.memory_space<vmem>>, vector<1x16x128xf32>
    %54 = vector.shape_cast %53 : vector<1x16x128xf32> to vector<16x128xf32>
    %55 = vector.shape_cast %52 : vector<16x128xf32> to vector<1x16x128xf32>
    tpu.vector_store %arg6[%c0_56, %c0_57, %c0_58], %55 {strides = array<i32>} : memref<1x16x128xf32, #tpu.memory_space<vmem>>, vector<1x16x128xf32>,
    return
  }
  func.func @transform_0(%arg0: i32) -> (i32, i32, i32) {
    %c0_i32 = arith.constant 0 : i32
    %c0_i32_0 = arith.constant 0 : i32
    %c0_i32_1 = arith.constant 0 : i32
    return %arg0, %c0_i32, %c0_i32_0 : i32, i32, i32
  }
  func.func @transform_1(%arg0: i32) -> (i32, i32, i32) {
    %c0_i32 = arith.constant 0 : i32
    %c0_i32_0 = arith.constant 0 : i32
    %c0_i32_1 = arith.constant 0 : i32
    %c0_i32_2 = arith.constant 0 : i32
    return %c0_i32, %c0_i32_0, %c0_i32_1 : i32, i32, i32
  }
  func.func @transform_2(%arg0: i32) -> (i32, i32) {
    %c0_i32 = arith.constant 0 : i32
    %c0_i32_0 = arith.constant 0 : i32
    %c0_i32_1 = arith.constant 0 : i32
    return %c0_i32, %c0_i32_0 : i32, i32
  }
  func.func @transform_3(%arg0: i32) -> (i32, i32, i32) {
    %c0_i32 = arith.constant 0 : i32
    %c0_i32_0 = arith.constant 0 : i32
    %c0_i32_1 = arith.constant 0 : i32
    %c0_i32_2 = arith.constant 0 : i32
    return %c0_i32, %c0_i32_0, %c0_i32_1 : i32, i32, i32
  }
  func.func @transform_4(%arg0: i32) -> (i32, i32) {
    %c0_i32 = arith.constant 0 : i32
    %c0_i32_0 = arith.constant 0 : i32
    %c0_i32_1 = arith.constant 0 : i32
    return %c0_i32, %c0_i32_0 : i32, i32
  }
  func.func @transform_5(%arg0: i32) -> (i32, i32, i32) {
    %c0_i32 = arith.constant 0 : i32
    %c0_i32_0 = arith.constant 0 : i32
    %c0_i32_1 = arith.constant 0 : i32
    return %arg0, %c0_i32, %c0_i32_0 : i32, i32, i32
  }
}

</mosaic_0001>

<bundles_post_ra>
// kernel: tpu_custom_call.1
= control target key start
LH: loop header
LB: loop body
LE: loop exit
PB: predicated region body
PF: predicated region fallthrough
CT: control target
= control target key end

     0   :  { %10 = vsyncpa [#allocation5], 0  ;;  %s1133_s0 = inlined_call_operand.hbm [shape: f32[2,16,64], index: 0, kind: input, shape index: {}]   ;;  %s1134_s1 = inlined_call_operand.hbm [shape: f32[3,64,128], index: 1, kind: input, shape index: {}]   ;;  %s1135_s2 = inlined_call_operand.vmem [shape: f32[1,128], index: 2, kind: input, shape index: {}]   ;;  %s1136_s3 = inlined_call_operand.hbm [shape: f32[3,128,128], index: 3, kind: input, shape index: {}]   ;;  %s1137_s4 = inlined_call_operand.vmem [shape: f32[1,128], index: 4, kind: input, shape index: {}]   ;;  %s1138_s5 = inlined_call_operand.hbm [shape: f32[2,16,128], index: 5, kind: output, shape index: {}]  }
   0x1   :  { %12 = vsyncpa [#allocation5 + $0x1], 0 }
   0x2   :  { %13 = vsyncpa [#allocation8], 0 }
   0x3   :  { %14 = vsyncpa [#allocation6], 0 }
   0x4   :  { %16 = vsyncpa [#allocation6 + $0x1], 0  ;;  %s965_s18 = smov 0   ;;  %s967_s19 = smov 0  }
   0x5   :  { %s969_s20 = smov 0   ;;  %s971_s21 = smov 0  }
   0x6 LB: > { %s986_s22 = sadd.s32 4294967295, %s926_s21   ;;  %s666_s23 = sadd.s32 4294967294, %s926_s21   ;;  %s926_s21 = sphi %s971_s21, %s1150_s21   ;;  %s922_s20 = sphi %s969_s20, %s1149_s20   ;;  %s918_s19 = sphi %s967_s19, %s1148_s19   ;;  %s914_s18 = sphi %s965_s18, %s1147_s18  }
   0x7   : > { %p42_p0 = scmp.ne.s32.totalorder %s918_s19, %s914_s18  ;;  %p43_p1 = scmp.eq.s32.totalorder %s986_s22, 0 }
   0x8   : > { %p150_p2 = scmp.eq.s32.totalorder %s986_s22, 1  ;;  %p156_p3 = scmp.eq.s32.totalorder %s666_s23, 1 }
   0x9   : > { %p995_p4 = por %p43_p1, %p42_p0  ;;  %p667_p5 = scmp.ge.s32.totalorder %s926_s21, 1 }
   0xa   : > { %p1000_p6 = por %p156_p3, %p42_p0  ;;  %p163_p7 = scmp.lt.s32.totalorder %s926_s21, 3 }
   0xb   : > { %s174_s28 = sshll.u32 %s1134_s1, 4  ;;  %s928_s30 = smov [#allocation7]   ;;  %s175_s28 = int_to_ptr.hbm [resolvable:$true] %s174_s28 }
   0xc   : > { %p1008_p8 = pnand %p667_p5, %p163_p7  ;;  %s176_s6 = sshll.u32 %s928_s30, 4  ;;  %s177_s6 = int_to_ptr.vmem [resolvable:$true] %s176_s6 }
   0xd   : > { %s191_s9 = sshll.u32 %s1136_s3, 4  ;;  %s1139_s10 = smov 128   ;;  %s192_s9 = int_to_ptr.hbm [resolvable:$true] %s191_s9 }
   0xe   : > { %p704_p9 = pneg %p1008_p8  ;;  %s930_s11 = smov 8  }
   0xf   : > { %s931_s12 = smov [#allocation9]   ;;  %s1027_s14 = sadd.s32 1, %s926_s21  }
  0x10   : > { %p705_p10 = pnand %p704_p9, %p43_p1  ;;  %s193_s13 = sshll.u32 %s931_s12, 4  ;;  %s194_s13 = int_to_ptr.vmem [resolvable:$true] %s193_s13 }
  0x11   : > { %s29_s15 = sadd.s32 1, %s922_s20  ;;  %s26_s16 = ssub.s32 %s926_s21, %s1027_s14 }
  0x12   : > { %707 = dma.hbm_to_vmem [thread:$0]  (!%p705_p10), %s175_s28, 3072, %s177_s6, [#allocation8], %s1139_s10, %s1139_s10, %s930_s11  }
  0x13   : > { %710 = dma.hbm_to_vmem [thread:$0]  (!%p705_p10), %s192_s9, 6144, %s194_s13, [#allocation8], %s1139_s10, %s1139_s10, %s930_s11  }
  0x14   : > { %p36_p12 = scmp.ne.s32.totalorder %s922_s20, %s918_s19  ;;  %p27_p13 = scmp.eq.s32.totalorder %s26_s16, 0 }
  0x15   : > { %p37_p0 = scmp.eq.s32.totalorder %s926_s21, 0  ;;  %p721_p5 = scmp.lt.s32.totalorder %s926_s21, 2 }
  0x16   : > { %p1037_p3 = por %p150_p2, %p36_p12  ;;  %s210_s26 = sand.u32 1, %s922_s20  }
  0x17   : > { %s1043_s23 = scalar_select %p27_p13, %s922_s20, %s29_s15  }
  0x18   : > { %p38_p7 = por %p37_p0, %p36_p12  ;;  %s671_s27 = sshll.u32 %s210_s26, 4 }
  0x19   : > { %s690_s28 = sshll.u32 %s926_s21, 4  ;;  %s214_s8 = scalar_lea.vmem [#allocation4], %s671_s27 }
  0x1a   : > { %s219_s7 = scalar_lea.hbm %s1133_s0, %s690_s28  ;;  %s222_s9 = sshll.u32 %s214_s8, 4  ;;  %s223_s9 = int_to_ptr.vmem [resolvable:$true] %s222_s9 }
  0x1b   : > { %s220_s12 = sshll.u32 %s219_s7, 4  ;;  %p1050_p2 = pnand %p721_p5, %p38_p7  ;;  %s221_s12 = int_to_ptr.hbm [resolvable:$true] %s220_s12 }
  0x1c   : > { %s211_s15 = scalar_lea.sflag [#allocation5], %s210_s26  ;;  %s826_s16 = sshra.s32 %s221_s12, 4  ;;  %s827_s16 = int_to_ptr.hbm [resolvable:$true] %s826_s16 }
  0x1d   : > { %s828_s10 = scalar_lea.hbm %s827_s16, 16  ;;  %p830_p10 = pneg %p1050_p2 }
  0x1e   : > { %p829_p9 = scmp.ne.s32.totalorder %s827_s16, %s828_s10  ;;  %s833_s30 = scalar_lea.hbm %s1133_s0, 32 }
  0x1f   : > { %p834_p0 = scmp.lt.s32.totalorder %s827_s16, %s1133_s0  ;;  %p835_p5 = scmp.lt.s32.totalorder %s833_s30, %s828_s10 }
  0x20   : > { %p831_p12 = pnand %p830_p10, %p829_p9 }
  0x21   : > { %p836_p7 = por %p835_p5, %p834_p0 }
  0x22   : > { %p832_p13 = pneg %p831_p12 }
  0x24   : > { %p837_p11 = pnand %p836_p7, %p832_p13 }
  0x26   : > { %840 = shalt.err (!%p837_p11)
}
  0x27   : > { %s1145_s26 = smov 128   ;;  %234 = sbr.rel (%p1008_p8) target bundleno = 377 (0x179), region = 40 }
  0x28   : > { %714 = dma.hbm_to_vmem [thread:$0]  (!%p1050_p2), %s221_s12, 256, %s223_s9, %s211_s15, %s1145_s26, %s1145_s26, %s930_s11  }
  0x29   : > { %s1070_s8 = sand.u32 (!%p1008_p8), 1, %s918_s19  }
  0x2a   : > { %s675_s10 = sshll.u32 (!%p1008_p8), %s1070_s8, 4  ;;  %s237_s16 = scalar_lea.sflag (!%p1008_p8), [#allocation5], %s1070_s8 }
  0x2b   : > { %s240_s28 = scalar_lea.vmem (!%p1008_p8), [#allocation4], %s675_s10 }
  0x2c   : > { %901 = dma.done.wait (%p995_p4), %s237_s16, 256  }
  0x2d   : > { %903 = vsyncadd (%p995_p4), %s237_s16, 4294967040 }
  0x2e   : > { %905 = dma.done.wait (%p43_p1), [#allocation8], 9216  }
  0x2f   : > { %907 = vsyncadd (%p43_p1), [#allocation8], 4294958080  ;;  %vm278_vm0 = vcmask 516096   ;;  %v932_v0 = vmov 0.0   ;;  %v306_v1 = vld [vmem:[#allocation7 + $0x78] sm:$0xff]  ;;  %v305_v2 = vld [vmem:[#allocation7 + $0x70] sm:$0xff] }
  0x30   : > { %279 = vst.msk [vmem:[#allocation2] sm:$0x1] %vm278_vm0, %v932_v0  ;;  %321 = vmatpush.msra.mxu2 %v306_v1  ;;  %v295_v3 = vld [vmem:[#allocation7 + $0x38] sm:$0xff]  ;;  %v304_v4 = vld [vmem:[#allocation7 + $0x68] sm:$0xff]  ;;  %v294_v5 = vld [vmem:[#allocation7 + $0x30] sm:$0xff]  ;;  %vm283_vm1 = vcmask 523264  }
  0x31   : > { %280 = vst.msk [vmem:[#allocation2 + $0x11] sm:$0x1] %vm278_vm0, %v932_v0  ;;  %350 = vmatpush.msra.mxu1 %v295_v3  ;;  %v293_v6 = vld [vmem:[#allocation7 + $0x28] sm:$0xff]  ;;  %v303_v7 = vld [vmem:[#allocation7 + $0x60] sm:$0xff]  ;;  %v302_v11 = vld [vmem:[#allocation7 + $0x58] sm:$0xff]  ;;  %s691_s12 = sshll.u32 %s986_s22, 4 }
  0x32   : > { %419 = vst [vmem:[#allocation3] sm:$0x1] %v932_v0  ;;  %322 = vmatpush.msra.mxu2 %v305_v2  ;;  %v281_v8 = vld [vmem:[%s240_s28] sm:$0xff]  ;;  %v282_v9 = vld [vmem:[%s240_s28 + $0x8] sm:$0xff]  ;;  %s570_s27 = scalar_lea.hbm %s1138_s5, %s691_s12  ;;  %s277_s30 = scalar_lea.vmem [#allocation10], %s675_s10 }
  0x33   : > { %420 = vst [vmem:[#allocation3 + $0x11] sm:$0x1] %v932_v0  ;;  %351 = vmatpush.msra.mxu1 %v294_v5  ;;  %v292_v10 = vld [vmem:[#allocation7 + $0x20] sm:$0xff]  ;;  %v291_v12 = vld [vmem:[#allocation7 + $0x18] sm:$0xff]  ;;  %v301_v13 = vld [vmem:[#allocation7 + $0x50] sm:$0xff]  ;;  %s571_s6 = sshll.u32 %s277_s30, 4  ;;  %s572_s6 = int_to_ptr.vmem [resolvable:$true] %s571_s6 }
  0x34   : > { %323 = vmatpush.msra.mxu2 %v304_v4  ;;  %284 = vst.msk [vmem:[#allocation2 + $0x1] sm:$0xff] %vm283_vm1, %v281_v8  ;;  %v290_v14 = vld [vmem:[#allocation7 + $0x10] sm:$0xff]  ;;  %v300_v15 = vld [vmem:[#allocation7 + $0x48] sm:$0xff]  ;;  %v299_v17 = vld [vmem:[#allocation7 + $0x40] sm:$0xff]  ;;  %s573_s7 = sshll.u32 %s570_s27, 4  ;;  %s559_s22 = scalar_lea.sflag [#allocation6], %s1070_s8  ;;  %s574_s7 = int_to_ptr.hbm [resolvable:$true] %s573_s7 }
  0x35   : > { %352 = vmatpush.msra.mxu1 %v293_v6  ;;  %285 = vst.msk [vmem:[#allocation2 + $0x9] sm:$0xff] %vm283_vm1, %v282_v9  ;;  %v289_v16 = vld [vmem:[#allocation7 + $0x8] sm:$0xff]  ;;  %v288_v19 = vld [vmem:[#allocation7] sm:$0xff]  ;;  %v375_v20 = vld [vmem:[#allocation7 + $0xb8] sm:$0xff]  ;;  %s870_s26 = sshra.s32 %s574_s7, 4  ;;  %s876_s24 = scalar_lea.hbm %s1138_s5, 32  ;;  %s871_s26 = int_to_ptr.hbm [resolvable:$true] %s870_s26 }
  0x36   : > { %324 = vmatpush.msra.mxu2 %v303_v7  ;;  %v374_v22 = vld [vmem:[#allocation7 + $0xb0] sm:$0xff]  ;;  %v373_v23 = vld [vmem:[#allocation7 + $0xa8] sm:$0xff]  ;;  %v372_v24 = vld [vmem:[#allocation7 + $0xa0] sm:$0xff]  ;;  %s872_s16 = scalar_lea.hbm %s871_s26, 16  ;;  %p877_p11 = scmp.lt.s32.totalorder %s871_s26, %s1138_s5 }
  0x37   : > { %353 = vmatpush.msra.mxu1 %v292_v10  ;;  %v371_v26 = vld [vmem:[#allocation7 + $0x98] sm:$0xff]  ;;  %v370_v28 = vld [vmem:[#allocation7 + $0x90] sm:$0xff]  ;;  %v369_v29 = vld [vmem:[#allocation7 + $0x88] sm:$0xff]  ;;  %p873_p1 = scmp.ne.s32.totalorder %s871_s26, %s872_s16  ;;  %p878_p2 = scmp.lt.s32.totalorder %s876_s24, %s872_s16 }
  0x38   : > { %325 = vmatpush.msra.mxu2 %v302_v11  ;;  %v368_v30 = vld [vmem:[#allocation7 + $0x80] sm:$0xff]  ;;  %v459_v33 = vld [vmem:[#allocation9 + $0xf8] sm:$0xff]  ;;  %v458_v34 = vld [vmem:[#allocation9 + $0xf0] sm:$0xff] }
  0x39   : > { %354 = vmatpush.msra.mxu1 %v291_v12  ;;  %460 = vmatpush.msra.mxu3 %v459_v33  ;;  %v457_v35 = vld [vmem:[#allocation9 + $0xe8] sm:$0xff]  ;;  %v456_v36 = vld [vmem:[#allocation9 + $0xe0] sm:$0xff]  ;;  %v440_v37 = vld [vmem:[#allocation9 + $0x78] sm:$0xff]  ;;  %p874_p4 = pnand %p873_p1, %p1037_p3  ;;  %p879_p9 = por %p878_p2, %p877_p11 }
  0x3a   : > { %326 = vmatpush.msra.mxu2 %v301_v13  ;;  %v455_v38 = vld [vmem:[#allocation9 + $0xd8] sm:$0xff]  ;;  %483 = vmatpush.msra.mxu0 %v440_v37  ;;  %v439_v39 = vld [vmem:[#allocation9 + $0x70] sm:$0xff]  ;;  %v438_v40 = vld [vmem:[#allocation9 + $0x68] sm:$0xff] }
  0x3b   : > { %355 = vmatpush.msra.mxu1 %v290_v14  ;;  %v296_v18 = vld [vmem:[#allocation2 + $0x1] sm:$0xff]  ;;  %461 = vmatpush.msra.mxu3 %v458_v34  ;;  %v437_v42 = vld [vmem:[#allocation9 + $0x60] sm:$0xff]  ;;  %v453_v43 = vld [vmem:[#allocation9 + $0xc8] sm:$0xff]  ;;  %p875_p8 = pneg %p874_p4 }
  0x3c   : > { %327 = vmatpush.msra.mxu2 %v300_v15  ;;  %v286_v21 = vld [vmem:[#allocation2] sm:$0xff]  ;;  %v297_v25 = vld [vmem:[#allocation2 + $0x9] sm:$0xff]  ;;  %484 = vmatpush.msra.mxu0 %v439_v39  ;;  %v434_v50 = vld [vmem:[#allocation9 + $0x48] sm:$0xff] }
  0x3d   : > { %356 = vmatpush.msra.mxu1 %v289_v16  ;;  %v287_v27 = vld [vmem:[#allocation2 + $0x8] sm:$0xff]  ;;  %462 = vmatpush.msra.mxu3 %v457_v35  ;;  %v454_v41 = vld [vmem:[#allocation9 + $0xd0] sm:$0xff]  ;;  %v452_v44 = vld [vmem:[#allocation9 + $0xc0] sm:$0xff]  ;;  %p880_p10 = pnand %p879_p9, %p875_p8 }
  0x3e   : > { %328 = vmatpush.msra.mxu2 %v299_v17  ;;  %v365_v31 = vld [vmem:[#allocation2 + $0x2] sm:$0xff]  ;;  %v366_v32 = vld [vmem:[#allocation2 + $0xa] sm:$0xff]  ;;  %485 = vmatpush.msra.mxu0 %v438_v40  ;;  %v522_v51 = vld [vmem:[#allocation9 + $0x168] sm:$0xff] }
  0x3f   : > { %679 = vmatmul.msk.f32.vlgmr.msra.gmra.mxu2 %vm283_vm1, %v296_v18  ;;  %357 = vmatpush.msra.mxu1 %v288_v19  ;;  %v436_v45 = vld [vmem:[#allocation9 + $0x58] sm:$0xff]  ;;  %v435_v48 = vld [vmem:[#allocation9 + $0x50] sm:$0xff]  ;;  %v433_v53 = vld [vmem:[#allocation9 + $0x40] sm:$0xff] }
  0x40   : > { %390 = vmatpush.msrb.mxu2 %v375_v20  ;;  %681 = vmatmul.msk.f32.vlgmr.msra.gmra.mxu1 %vm283_vm1, %v286_v21  ;;  %v524_v46 = vld [vmem:[#allocation9 + $0x178] sm:$0xff]  ;;  %v523_v49 = vld [vmem:[#allocation9 + $0x170] sm:$0xff]  ;;  %v521_v54 = vld [vmem:[#allocation9 + $0x160] sm:$0xff] }
  0x41   : > { %463 = vmatpush.msra.mxu3 %v456_v36  ;;  %486 = vmatpush.msra.mxu0 %v437_v42  ;;  %v451_v47 = vld [vmem:[#allocation9 + $0xb8] sm:$0xff]  ;;  %v450_v52 = vld [vmem:[#allocation9 + $0xb0] sm:$0xff]  ;;  %v449_v55 = vld [vmem:[#allocation9 + $0xa8] sm:$0xff] }
  0x42   : > { %391 = vmatpush.msrb.mxu2 %v374_v22  ;;  %525 = vmatpush.msrb.mxu1 %v524_v46  ;;  %v448_v56 = vld [vmem:[#allocation9 + $0xa0] sm:$0xff]  ;;  %v432_v57 = vld [vmem:[#allocation9 + $0x38] sm:$0xff]  ;;  %v431_v60 = vld [vmem:[#allocation9 + $0x30] sm:$0xff] }
  0x43   : > { %464 = vmatpush.msra.mxu3 %v455_v38  ;;  %487 = vmatpush.msra.mxu0 %v436_v45  ;;  %v520_v58 = vld [vmem:[#allocation9 + $0x158] sm:$0xff]  ;;  %v519_v61 = vld [vmem:[#allocation9 + $0x150] sm:$0xff]  ;;  %v430_v63 = vld [vmem:[#allocation9 + $0x28] sm:$0xff] }
  0x44   : > { %392 = vmatpush.msrb.mxu2 %v373_v23  ;;  %526 = vmatpush.msrb.mxu1 %v523_v49  ;;  %v447_v59 = vld [vmem:[#allocation9 + $0x98] sm:$0xff]  ;;  %v446_v62 = vld [vmem:[#allocation9 + $0x90] sm:$0xff]  ;;  %v518_v0 = vld [vmem:[#allocation9 + $0x148] sm:$0xff] }
  0x45   : > { %465 = vmatpush.msra.mxu3 %v454_v41  ;;  %488 = vmatpush.msra.mxu0 %v435_v48  ;;  %v445_v1 = vld [vmem:[#allocation9 + $0x88] sm:$0xff]  ;;  %v429_v2 = vld [vmem:[#allocation9 + $0x20] sm:$0xff]  ;;  %v428_v5 = vld [vmem:[#allocation9 + $0x18] sm:$0xff] }
  0x46   : > { %393 = vmatpush.msrb.mxu2 %v372_v24  ;;  %527 = vmatpush.msrb.mxu1 %v522_v51  ;;  %v517_v3 = vld [vmem:[#allocation9 + $0x140] sm:$0xff]  ;;  %v516_v6 = vld [vmem:[#allocation9 + $0x138] sm:$0xff]  ;;  %v427_v7 = vld [vmem:[#allocation9 + $0x10] sm:$0xff] }
  0x47   : > { %680 = vmatmul.msk.f32.gmra.mxu2 %vm283_vm1, %v297_v25  ;;  %466 = vmatpush.msra.mxu3 %v453_v43  ;;  %v444_v4 = vld [vmem:[#allocation9 + $0x80] sm:$0xff]  ;;  %v515_v8 = vld [vmem:[#allocation9 + $0x130] sm:$0xff]  ;;  %v426_v9 = vld [vmem:[#allocation9 + $0x8] sm:$0xff] }
  0x48   : > { %394 = vmatpush.msrb.mxu2 %v371_v26  ;;  %682 = vmatmul.msk.f32.gmra.mxu1 %vm283_vm1, %v287_v27  ;;  %v514_v10 = vld [vmem:[#allocation9 + $0x128] sm:$0xff]  ;;  %v425_v11 = vld [vmem:[#allocation9] sm:$0xff]  ;;  %v512_v14 = vld [vmem:[#allocation9 + $0x118] sm:$0xff] }
  0x49   : > { %467 = vmatpush.msra.mxu3 %v452_v44  ;;  %489 = vmatpush.msra.mxu0 %v434_v50  ;;  %v513_v12 = vld [vmem:[#allocation9 + $0x120] sm:$0xff]  ;;  %v511_v15 = vld [vmem:[#allocation9 + $0x110] sm:$0xff]  ;;  %v510_v16 = vld [vmem:[#allocation9 + $0x108] sm:$0xff] }
  0x4a   : > { %395 = vmatpush.msrb.mxu2 %v370_v28  ;;  %528 = vmatpush.msrb.mxu1 %v521_v54  ;;  %v509_v17 = vld [vmem:[#allocation9 + $0x100] sm:$0xff]  ;;  %v764_v21 = vld [vmem:[%s1135_s2] ss:$0 sm:$0xff] }
  0x4b   : > { %468 = vmatpush.msra.mxu3 %v451_v47  ;;  %490 = vmatpush.msra.mxu0 %v433_v53  ;;  %v765_v41 = vld [vmem:[%s1137_s4] ss:$0 sm:$0xff] }
  0x4c   : > { %396 = vmatpush.msrb.mxu2 %v369_v29  ;;  %529 = vmatpush.msrb.mxu1 %v520_v58 }
  0x4d   : > { %469 = vmatpush.msra.mxu3 %v450_v52  ;;  %491 = vmatpush.msra.mxu0 %v432_v57 }
  0x4e   : > { %397 = vmatpush.msrb.mxu2 %v368_v30  ;;  %530 = vmatpush.msrb.mxu1 %v519_v61 }
  0x4f   : > { %683 = vmatmul.msk.f32.vlgmr.msrb.gmra.mxu2 %vm283_vm1, %v365_v31  ;;  %470 = vmatpush.msra.mxu3 %v449_v55 }
  0x50   : > { %492 = vmatpush.msra.mxu0 %v431_v60  ;;  %531 = vmatpush.msrb.mxu1 %v518_v0 }
  0x51   : > { %471 = vmatpush.msra.mxu3 %v448_v56 }
  0x52   : > { %493 = vmatpush.msra.mxu0 %v430_v63  ;;  %532 = vmatpush.msrb.mxu1 %v517_v3 }
  0x53   : > { %472 = vmatpush.msra.mxu3 %v447_v59 }
  0x54   : > { %494 = vmatpush.msra.mxu0 %v429_v2  ;;  %533 = vmatpush.msrb.mxu1 %v516_v6 }
  0x55   : > { %473 = vmatpush.msra.mxu3 %v446_v62 }
  0x56   : > { %495 = vmatpush.msra.mxu0 %v428_v5  ;;  %534 = vmatpush.msrb.mxu1 %v515_v8 }
  0x57   : > { %684 = vmatmul.msk.f32.gmra.mxu2 %vm283_vm1, %v366_v32  ;;  %474 = vmatpush.msra.mxu3 %v445_v1 }
  0x58   : > { %496 = vmatpush.msra.mxu0 %v427_v7  ;;  %535 = vmatpush.msrb.mxu1 %v514_v10 }
  0x59   : > { %475 = vmatpush.msra.mxu3 %v444_v4 }
  0x5a   : > { %497 = vmatpush.msra.mxu0 %v426_v9  ;;  %536 = vmatpush.msrb.mxu1 %v513_v12 }
  0x5c   : > { %498 = vmatpush.msra.mxu0 %v425_v11  ;;  %537 = vmatpush.msrb.mxu1 %v512_v14 }
  0x5e   : > { %538 = vmatpush.msrb.mxu1 %v511_v15 }
  0x60   : > { %539 = vmatpush.msrb.mxu1 %v510_v16 }
  0x62   : > { %540 = vmatpush.msrb.mxu1 %v509_v17 }
  0xbd   : > { %v359_v19 = vpop.f32.mrf.mxu1 }
  0xc2   : > { %v330_v13 = vpop.f32.mrf.mxu2 }
  0xc3   : > { %v360_v20 = vadd.f32 %v359_v19, %v330_v13 }
  0xc5   : > { %v362_v25 = vpop.f32.mrf.mxu1 }
  0xca   : > { %v333_v18 = vpop.f32.mrf.mxu2 }
  0xcb   : > { %v363_v27 = vadd.f32 %v362_v25, %v333_v18 }
  0xd2   : > { %v399_v22 = vpop.f32.mrf.mxu2 }
  0xd3   : > { %v405_v23 = vadd.f32 %v399_v22, %v360_v20 }
  0xd5   : > { %v411_v24 = vadd.f32 %v764_v21, %v405_v23 }
  0xd7   : > { %vm413_vm2 = vcmp.gt.f32.partialorder %v411_v24, 0.0  ;;  %v415_v26 = vmul.f32 0.2, %v411_v24 }
  0xd9   : > { %v417_v28 = vsel %vm413_vm2, %v411_v24, %v415_v26 }
  0xda   : > { %421 = vst [vmem:[#allocation3 + $0x1] sm:$0xff] %v417_v28  ;;  %v402_v29 = vpop.f32.mrf.mxu2  ;;  %476 = vmatmul.f32.vlgmr.msra.gmra.mxu3 %v417_v28 }
  0xdb   : > { %v406_v30 = vadd.f32 %v402_v29, %v363_v27 }
  0xdd   : > { %v412_v31 = vadd.f32 %v764_v21, %v406_v30 }
  0xdf   : > { %vm414_vm3 = vcmp.gt.f32.partialorder %v412_v31, 0.0  ;;  %v416_v32 = vmul.f32 0.2, %v412_v31 }
  0xe1   : > { %v418_v33 = vsel %vm414_vm3, %v412_v31, %v416_v32  ;;  %v423_v34 = vld [vmem:[#allocation3] sm:$0xff] }
  0xe2   : > { %422 = vst [vmem:[#allocation3 + $0x9] sm:$0xff] %v418_v33  ;;  %499 = vmatmul.f32.vlgmr.msra.gmra.mxu0 %v423_v34  ;;  %479 = vmatmul.f32.gmra.mxu3 %v418_v33 }
  0xe9   : > { %v424_v35 = vld [vmem:[#allocation3 + $0x8] sm:$0xff] }
  0xea   : > { %v506_v36 = vld [vmem:[#allocation3 + $0x2] sm:$0xff]  ;;  %502 = vmatmul.f32.gmra.mxu0 %v424_v35  ;;  %v507_v37 = vld [vmem:[#allocation3 + $0xa] sm:$0xff] }
  0xeb   : > { %541 = vmatmul.f32.vlgmr.msrb.gmra.mxu1 %v506_v36 }
  0xf3   : > { %544 = vmatmul.f32.gmra.mxu1 %v507_v37 }
 0x15d   : > { %v477_v39 = vpop.f32.mrf.mxu3 }
 0x15f   : > { %v500_v38 = vpop.f32.mrf.mxu0 }
 0x160   : > { %v501_v40 = vadd.f32 %v500_v38, %v477_v39 }
 0x165   : > { %v480_v46 = vpop.f32.mrf.mxu3 }
 0x167   : > { %v503_v45 = vpop.f32.mrf.mxu0 }
 0x168   : > { %v542_v42 = vpop.f32.mrf.mxu1  ;;  %v504_v47 = vadd.f32 %v503_v45, %v480_v46 }
 0x169   : > { %v548_v43 = vadd.f32 %v542_v42, %v501_v40 }
 0x16b   : > { %v554_v44 = vadd.f32 %v765_v41, %v548_v43 }
 0x16d   : > { %556 = vst [vmem:[%s277_s30] sm:$0xff] %v554_v44 }
 0x170   : > { %v545_v48 = vpop.f32.mrf.mxu1 }
 0x171   : > { %v549_v49 = vadd.f32 %v545_v48, %v504_v47 }
 0x173   : > { %v555_v50 = vadd.f32 %v765_v41, %v549_v49 }
 0x175   : > { %557 = vst [vmem:[%s277_s30 + $0x8] sm:$0xff] %v555_v50 }
 0x176   : > { %883 = shalt.err (!%p880_p10)
}
 0x177   : > { %s933_s8 = smov 128   ;;  %s934_s9 = smov 8  }
 0x178   : > { %702 = dma.vmem_to_hbm [thread:$0]  (%p1037_p3), %s572_s6, 256, %s574_s7, %s559_s22, %s933_s8, %s933_s8, %s934_s9  }
 0x179 PF: > { %s588_s12 = sand.u32 1, %s914_s18   ;;  %p1146_p12 = scmp.ge.s32.totalorder %s926_s21, 2 }
 0x17a   : > { %s589_s13 = scalar_lea.sflag [#allocation6], %s588_s12 }
 0x17b   : > { %p716_p13 = pnand %p1146_p12, %p1000_p6 }
 0x17d   : > { %p717_p0 = pneg %p716_p13 }
 0x17f   : > { %909 = dma.done.wait (%p717_p0), %s589_s13, 256  }
 0x180   : > { %911 = vsyncadd (%p717_p0), %s589_s13, 4294967040  ;;  %p19_p5 = scmp.ge.s32.totalorder %s1027_s14, 4   ;;  %s1147_s18 = smov %s918_s19 }
 0x181   : > { %s1148_s19 = smov %s922_s20  ;;  %s1149_s20 = smov %s1043_s23 }
 0x182   : > { %s1150_s21 = smov %s1027_s14  ;;  %21 = sbr.rel (!%p19_p5) target bundleno = 6 (0x6), region = 97 }
 0x187   :  { %595 = vsyncpa [#allocation5], 1 }
 0x188   :  { %597 = vsyncpa [#allocation5 + $0x1], 1 }
 0x189   :  { %598 = vsyncpa [#allocation8], 1 }
 0x18a   :  { %599 = vsyncpa [#allocation6], 1 }
 0x18b   :  { %601 = vsyncpa [#allocation6 + $0x1], 1 }

</bundles_post_ra>
